<compile_context>
chip_gen: v7x
topology: tpu7x:2x2x1
jax: 0.10.0
libtpu: 0.0.40
codegen_flags: <defaults>
</compile_context>

<pallas_src>
import jax
import jax.numpy as jnp
from jax.experimental import pallas as pl
from jax.experimental.pallas import tpu as pltpu

_LANE = 128          # TPU lane width (last dim)
_SUB = 8             # sublane granularity (second-to-last dim)
_MAX_ROWS = 4096     # rows per grid step -> 4096*128*4B = 2 MiB f32 per input


def _mse_partial_kernel(rep_ref, lab_ref, out_ref):
    """One grid step: write the (8, 128) vreg-shaped partial sum of (rep-lab)^2.

    rep_ref / lab_ref: (tb_rows, 128) VMEM tiles (tb_rows is a multiple of 8).
    out_ref: (8, 128) f32 block, unique per grid step (no cross-step state,
             so the grid axis is safe to mark "parallel").
    """
    diff = rep_ref[...].astype(jnp.float32) - lab_ref[...].astype(jnp.float32)
    sq = diff * diff
    # Fold the sublane axis onto itself: (tb_rows, 128) -> (tb_rows//8, 8, 128)
    # and sum over the leading axis — elementwise vreg adds on the VPU, which
    # hide under the input DMA.  The expensive cross-lane reduce happens once,
    # in the wrapper, over a tiny (num_blocks*8, 128) array.
    out_ref[...] = jnp.sum(sq.reshape(-1, _SUB, _LANE), axis=0)


def mse_loss_pallas(rep: jax.Array, labels: jax.Array) -> jax.Array:
    """Mean squared error between rep and labels (same shape). Returns scalar f32."""
    assert rep.shape == labels.shape, (rep.shape, labels.shape)
    n = rep.size

    # Flatten to lane-dense (rows, 128); pick a large, generation-safe tile.
    rows_needed = -(-n // _LANE)
    tb_rows = min(_MAX_ROWS, -(-rows_needed // _SUB) * _SUB)   # multiple of 8
    block_elems = tb_rows * _LANE
    num_blocks = -(-n // block_elems)
    padded_n = num_blocks * block_elems

    rep_flat = rep.reshape(-1)
    lab_flat = labels.reshape(-1)
    if padded_n != n:
        # Zero-pad both sides: padded positions contribute (0-0)^2 = 0.
        rep_flat = jnp.pad(rep_flat, (0, padded_n - n))
        lab_flat = jnp.pad(lab_flat, (0, padded_n - n))
    rep2 = rep_flat.reshape(num_blocks * tb_rows, _LANE)
    lab2 = lab_flat.reshape(num_blocks * tb_rows, _LANE)

    partials = pl.pallas_call(
        _mse_partial_kernel,
        out_shape=jax.ShapeDtypeStruct((num_blocks * _SUB, _LANE), jnp.float32),
        grid_spec=pltpu.PrefetchScalarGridSpec(
            num_scalar_prefetch=0,
            grid=(num_blocks,),
            in_specs=[
                pl.BlockSpec((tb_rows, _LANE), lambda i: (i, 0)),
                pl.BlockSpec((tb_rows, _LANE), lambda i: (i, 0)),
            ],
            out_specs=pl.BlockSpec((_SUB, _LANE), lambda i: (i, 0)),
        ),
        compiler_params=pltpu.CompilerParams(
            # Each step owns its output block -> safe & fast on v7x megacore.
            dimension_semantics=("parallel",),
        ),
    )(rep2, lab2)

    # Tiny final reduction + mean over the *true* element count.
    return jnp.sum(partials) / jnp.float32(n)


# ---------------------------------------------------------------------------
# Synthetic deterministic "SentenceTransformer" stub (plain-JAX glue):
# mean pooling over the token axis followed by a linear projection.
# ---------------------------------------------------------------------------
def stub_sentence_model(token_embeds: jax.Array, w: jax.Array, b: jax.Array) -> jax.Array:
    # token_embeds: (B, T, D_in) -> sentence_embedding: (B, D_out)
    pooled = jnp.mean(token_embeds, axis=1)          # (B, D_in)
    return pooled @ w + b                            # (B, D_out)


def mse_loss_forward(sentence_features, labels, params):
    """Mirror of MSELoss.forward: model(features[0])['sentence_embedding'] vs labels."""
    # TODO(synk): optionally fuse the projection into the Pallas kernel to avoid
    # the rep HBM round trip (write + re-read); kept in XLA here for clarity.
    rep = stub_sentence_model(
        sentence_features[0]["token_embeddings"], params["w"], params["b"]
    )
    return mse_loss_pallas(rep, labels)


if __name__ == "__main__":
    key = jax.random.PRNGKey(0)
    k1, k2, k3, k4 = jax.random.split(key, 4)

    B, T, D_in, D_out = 16, 8, 64, 256  # small shapes, lane-aligned hidden dims

    token_embeds = jax.random.normal(k1, (B, T, D_in), dtype=jnp.float32)
    labels = jax.random.normal(k2, (B, D_out), dtype=jnp.float32)

    # Deterministic parameter init for the stub model.
    params = {
        "w": jax.random.normal(k3, (D_in, D_out), dtype=jnp.float32) * 0.02,
        "b": jnp.zeros((D_out,), dtype=jnp.float32),
    }

    sentence_features = [{"token_embeddings": token_embeds}]

    loss = mse_loss_forward(sentence_features, labels, params)
    loss = jax.block_until_ready(loss)

    # Reference check (plain JAX) for the kernel's MSE.
    rep_ref = stub_sentence_model(token_embeds, params["w"], params["b"])
    ref = jnp.mean((rep_ref - labels) ** 2)
    assert jnp.allclose(loss, ref, rtol=1e-5, atol=1e-6), (loss, ref)

    # Extra check: ragged size (forces the pad/mask path) + bf16 inputs.
    rep_odd = jax.random.normal(k4, (7, 100), dtype=jnp.bfloat16)
    lab_odd = jax.random.normal(k2, (7, 100), dtype=jnp.bfloat16)
    loss_odd = jax.block_until_ready(mse_loss_pallas(rep_odd, lab_odd))
    ref_odd = jnp.mean(
        (rep_odd.astype(jnp.float32) - lab_odd.astype(jnp.float32)) ** 2
    )
    assert jnp.allclose(loss_odd, ref_odd, rtol=1e-5, atol=1e-6), (loss_odd, ref_odd)

    print("KERNEL_OK")
</pallas_src>

<mosaic_0001>
module attributes {stable_mosaic.version = 11 : i64} {
  func.func @_mse_partial_kernel(%arg0: i32, %arg1: memref<32x128xf32, #tpu.memory_space<vmem>>, %arg2: memref<32x128xf32, #tpu.memory_space<vmem>>, %arg3: memref<8x128xf32, #tpu.memory_space<vmem>>) attributes {dimension_semantics = [#tpu.dimension_semantics<parallel>], iteration_bounds = array<i64: 1>, scalar_prefetch = 0 : i64, scratch_operands = 0 : i64, tpu.core_type = #tpu.core_type<tc>, window_params = [{transform_indices = @transform_0, window_bounds = array<i64: 32, 128>}, {transform_indices = @transform_1, window_bounds = array<i64: 32, 128>}, {transform_indices = @transform_2, window_bounds = array<i64: 8, 128>}]} {
    %c0 = arith.constant 0 : index
    %c0_0 = arith.constant 0 : index
    %0 = vector.load %arg1[%c0, %c0_0] : memref<32x128xf32, #tpu.memory_space<vmem>>, vector<32x128xf32>
    %c0_1 = arith.constant 0 : index
    %c0_2 = arith.constant 0 : index
    %1 = vector.load %arg2[%c0_1, %c0_2] : memref<32x128xf32, #tpu.memory_space<vmem>>, vector<32x128xf32>
    %2 = arith.subf %0, %1 : vector<32x128xf32>
    %3 = arith.mulf %2, %2 : vector<32x128xf32>
    %4 = vector.shape_cast %3 : vector<32x128xf32> to vector<4x8x128xf32>
    %cst = arith.constant dense<0.000000e+00> : vector<8x128xf32>
    %5 = vector.multi_reduction <add>, %4, %cst [0] : vector<4x8x128xf32> to vector<8x128xf32>
    %c0_3 = arith.constant 0 : index
    %c0_4 = arith.constant 0 : index
    %6 = vector.load %arg3[%c0_3, %c0_4] : memref<8x128xf32, #tpu.memory_space<vmem>>, vector<8x128xf32>
    tpu.vector_store %arg3[%c0_3, %c0_4], %5 {strides = array<i32>} : memref<8x128xf32, #tpu.memory_space<vmem>>, vector<8x128xf32>,
    return
  }
  func.func @transform_0(%arg0: i32) -> (i32, i32) {
    %c0_i32 = arith.constant 0 : i32
    %c0_i32_0 = arith.constant 0 : i32
    return %arg0, %c0_i32 : i32, i32
  }
  func.func @transform_1(%arg0: i32) -> (i32, i32) {
    %c0_i32 = arith.constant 0 : i32
    %c0_i32_0 = arith.constant 0 : i32
    return %arg0, %c0_i32 : i32, i32
  }
  func.func @transform_2(%arg0: i32) -> (i32, i32) {
    %c0_i32 = arith.constant 0 : i32
    %c0_i32_0 = arith.constant 0 : i32
    return %arg0, %c0_i32 : i32, i32
  }
}

</mosaic_0001>

<bundles_post_ra>
// kernel: tpu_custom_call.1
= control target key start
LH: loop header
LB: loop body
LE: loop exit
PB: predicated region body
PF: predicated region fallthrough
CT: control target
= control target key end

     0   :  { %7 = vsyncpa [#allocation3], 0  ;;  %s209_s0 = inlined_call_operand.hbm [shape: f32[32,128], index: 0, kind: input, shape index: {}]   ;;  %s210_s1 = inlined_call_operand.hbm [shape: f32[32,128], index: 1, kind: input, shape index: {}]   ;;  %s211_s2 = inlined_call_operand.hbm [shape: f32[8,128], index: 2, kind: output, shape index: {}]  }
   0x1   :  { %8 = vsyncpa [#allocation6], 0 }
   0x2   :  { %9 = vsyncpa [#allocation4], 0  ;;  %s153_s9 = smov [#allocation2]   ;;  %s81_s13 = scalar_lea.hbm %s209_s0, 512 }
   0x3   :  { %s15_s10 = sshll.u32 %s153_s9, 4  ;;  %p82_p0 = scmp.ne.s32.totalorder %s209_s0, %s81_s13  ;;  %s16_s10 = int_to_ptr.vmem [resolvable:$true] %s15_s10 }
   0x4   :  { %p85_p1 = scmp.lt.u32.totalorder %s81_s13, %s209_s0 }
   0x6   :  { %p87_p2 = pnand %p85_p1, %p82_p0 }
   0x8   :  { %90 = shalt.err (!%p87_p2)
}
   0x9   :  { %s91_s18 = scalar_lea.vmem %s16_s10, 512  ;;  %p96_p4 = scmp.lt.s32.totalorder %s16_s10, %s16_s10 }
   0xa   :  { %p92_p3 = scmp.ne.s32.totalorder %s16_s10, %s91_s18  ;;  %p97_p5 = scmp.lt.s32.totalorder %s91_s18, %s91_s18 }
   0xc   :  { %p98_p6 = por %p97_p5, %p96_p4 }
   0xe   :  { %p99_p7 = pnand %p98_p6, %p92_p3 }
  0x10   :  { %102 = shalt.err (!%p99_p7)
}
  0x11   :  { %s154_s19 = smov 128   ;;  %s155_s20 = smov 8  }
  0x12   :  { %21 = dma.hbm_to_vmem [thread:$0]  %s209_s0, 512, %s16_s10, [#allocation3], %s154_s19, %s154_s19, %s155_s20  }
  0x13   :  { %s156_s23 = smov [#allocation5]   ;;  %s103_s27 = scalar_lea.hbm %s210_s1, 512 }
  0x14   :  { %s27_s24 = sshll.u32 %s156_s23, 4  ;;  %p104_p8 = scmp.ne.s32.totalorder %s210_s1, %s103_s27  ;;  %s28_s24 = int_to_ptr.vmem [resolvable:$true] %s27_s24 }
  0x15   :  { %p107_p9 = scmp.lt.u32.totalorder %s103_s27, %s210_s1 }
  0x17   :  { %p109_p10 = pnand %p107_p9, %p104_p8 }
  0x19   :  { %112 = shalt.err (!%p109_p10)
}
  0x1a   :  { %s113_s4 = scalar_lea.vmem %s28_s24, 512  ;;  %p118_p12 = scmp.lt.s32.totalorder %s28_s24, %s28_s24 }
  0x1b   :  { %p114_p11 = scmp.ne.s32.totalorder %s28_s24, %s113_s4  ;;  %p119_p13 = scmp.lt.s32.totalorder %s113_s4, %s113_s4 }
  0x1d   :  { %p120_p0 = por %p119_p13, %p118_p12 }
  0x1f   :  { %p121_p1 = pnand %p120_p0, %p114_p11 }
  0x21   :  { %124 = shalt.err (!%p121_p1)
}
  0x22   :  { %33 = dma.hbm_to_vmem [thread:$0]  %s210_s1, 512, %s28_s24, [#allocation6], %s154_s19, %s154_s19, %s155_s20  }
  0x23   :  { %147 = dma.done.wait [#allocation3], 512  }
  0x24   :  { %148 = vsyncadd [#allocation3], 4294966784 }
  0x25   :  { %149 = dma.done.wait [#allocation6], 512  }
  0x26   :  { %150 = vsyncadd [#allocation6], 4294966784  ;;  %v40_v0 = vld [vmem:[#allocation2] sm:$0xff]  ;;  %v41_v1 = vld [vmem:[#allocation2 + $0x8] sm:$0xff]  ;;  %s157_s1 = smov [#allocation7]  }
  0x27   :  { %v42_v2 = vld [vmem:[#allocation2 + $0x10] sm:$0xff]  ;;  %v43_v3 = vld [vmem:[#allocation2 + $0x18] sm:$0xff]  ;;  %v44_v4 = vld [vmem:[#allocation5] sm:$0xff]  ;;  %s66_s6 = sshll.u32 %s157_s1, 4  ;;  %s67_s6 = int_to_ptr.vmem [resolvable:$true] %s66_s6 }
  0x28   :  { %v45_v5 = vld [vmem:[#allocation5 + $0x8] sm:$0xff]  ;;  %v46_v6 = vld [vmem:[#allocation5 + $0x10] sm:$0xff]  ;;  %v47_v7 = vld [vmem:[#allocation5 + $0x18] sm:$0xff]  ;;  %v48_v8 = vsub.f32 %v40_v0, %v44_v4  ;;  %s125_s7 = scalar_lea.vmem %s67_s6, 128  ;;  %p130_p3 = scmp.lt.s32.totalorder %s67_s6, %s67_s6 }
  0x29   :  { %v49_v9 = vsub.f32 %v41_v1, %v45_v5  ;;  %v50_v10 = vsub.f32 %v42_v2, %v46_v6  ;;  %v51_v11 = vsub.f32 %v43_v3, %v47_v7  ;;  %p126_p2 = scmp.ne.s32.totalorder %s67_s6, %s125_s7  ;;  %p131_p4 = scmp.lt.s32.totalorder %s125_s7, %s125_s7 }
  0x2a   :  { %v52_v12 = vmul.f32 %v48_v8, %v48_v8 }
  0x2b   :  { %v53_v13 = vmul.f32 %v49_v9, %v49_v9  ;;  %v54_v14 = vmul.f32 %v50_v10, %v50_v10  ;;  %v55_v15 = vmul.f32 %v51_v11, %v51_v11  ;;  %p132_p5 = por %p131_p4, %p130_p3 }
  0x2d   :  { %v56_v16 = vadd.f32 %v53_v13, %v52_v12  ;;  %p133_p6 = pnand %p132_p5, %p126_p2 }
  0x2f   :  { %v57_v17 = vadd.f32 %v56_v16, %v54_v14 }
  0x31   :  { %v58_v18 = vadd.f32 %v57_v17, %v55_v15 }
  0x33   :  { %59 = vst [vmem:[#allocation7] sm:$0xff] %v58_v18 }
  0x34   :  { %136 = shalt.err (!%p133_p6)
}
  0x35   :  { %s137_s10 = scalar_lea.hbm %s211_s2, 128 }
  0x36   :  { %p138_p7 = scmp.ne.s32.totalorder %s211_s2, %s137_s10  ;;  %p141_p8 = scmp.lt.u32.totalorder %s137_s10, %s211_s2 }
  0x38   :  { %p143_p9 = pnand %p141_p8, %p138_p7 }
  0x3a   :  { %146 = shalt.err (!%p143_p9)
}
  0x3b   :  { %69 = dma.vmem_to_hbm [thread:$0]  %s67_s6, 128, %s211_s2, [#allocation4]  }
  0x3c   :  { %151 = dma.done.wait [#allocation4], 128  }
  0x3d   :  { %152 = vsyncadd [#allocation4], 4294967168 }
  0x3e   :  { %73 = vsyncpa [#allocation3], 1 }
  0x3f   :  { %74 = vsyncpa [#allocation6], 1 }
  0x40   :  { %75 = vsyncpa [#allocation4], 1 }

</bundles_post_ra>
